<compile_context>
chip_gen: v7x
topology: tpu7x:2x2x1
jax: 0.10.0
libtpu: 0.0.40
codegen_flags: <defaults>
</compile_context>

<pallas_src>
import functools

import jax
import jax.numpy as jnp
from jax.experimental import pallas as pl
from jax.experimental.pallas import tpu as pltpu

N_IN_CHANS = 3
N_OUT_CHANS = 10


def _round_up(a, b):
    return (a + b - 1) // b * b


def fold_conv_pool_weight(weight, H, W):
    """Fold conv3x3(pad=1, stride=1, bias=False) + global avg pool into A: (Cin*H*W, Cout).

    weight: (3, 3, Cin, Cout) f32, (kh, kw, ci, co).
    Exact only for the Module0 configuration (stride 1, zero pad 1, no bias, global pool).
    """
    Cout = weight.shape[-1]
    r = jnp.arange(H)
    c = jnp.arange(W)
    # Pixel (r, c) participates in the kh/kw tap iff the shifted window stays in-bounds
    # (zero padding):  kh=0: r <= H-2, kh=1: always, kh=2: r >= 1  (same for columns).
    row_f = jnp.stack([(r <= H - 2).astype(jnp.float32),
                       jnp.ones((H,), jnp.float32),
                       (r >= 1).astype(jnp.float32)], axis=1)          # (H, 3) indexed by kh
    col_f = jnp.stack([(c <= W - 2).astype(jnp.float32),
                       jnp.ones((W,), jnp.float32),
                       (c >= 1).astype(jnp.float32)], axis=1)          # (W, 3) indexed by kw
    # A[ci, r, c, co] = sum_{kh,kw} row_f[r,kh] * col_f[c,kw] * W[kh,kw,ci,co]
    A = jnp.einsum('rk,cl,klio->irco', row_f, col_f, weight.astype(jnp.float32))
    A = (A / (H * W)).reshape(-1, Cout)                                # fold 1/(H*W) pool scale
    return A.astype(jnp.bfloat16)                                      # bf16 MXU feed


def _block_kernel(x_ref, a_ref, tgt_ref, loss_ref, *, n_valid, tm):
    # Fused conv+pool: one lane-dense (TM, K) x (K, Cout) MXU dot, f32 accumulation.
    pooled = jnp.dot(x_ref[...], a_ref[...],
                     preferred_element_type=jnp.float32)               # (TM, Cout) f32

    # Stable log-softmax pieces without materializing logp:
    #   -logprob[target] = lse - logit[target]
    m = jnp.max(pooled, axis=-1, keepdims=True)
    lse = m + jnp.log(jnp.sum(jnp.exp(pooled - m), axis=-1, keepdims=True))   # (TM, 1)

    cls = jax.lax.broadcasted_iota(jnp.int32, pooled.shape, 1)          # (TM, Cout)
    picked = jnp.sum(jnp.where(cls == tgt_ref[...], pooled, 0.0),
                     axis=-1, keepdims=True)                            # (TM, 1) logit@target

    # Mask padded batch rows (global row index >= n_valid).
    rows = pl.program_id(0) * tm + jax.lax.broadcasted_iota(jnp.int32, (tm, 1), 0)
    per_row = jnp.where(rows < n_valid, lse - picked, 0.0)              # (TM, 1)

    # Scalar partial loss for this block goes straight to SMEM (no padded VMEM tile).
    loss_ref[0, 0] = jnp.sum(per_row)


def module0_loss(image, targets, A):
    """image: (N, Cin, H, W) f32 (NCHW), targets: (N,) int32, A: (Cin*H*W, Cout) bf16."""
    N, Cin, H, W = image.shape
    K, Cout = A.shape
    assert K == Cin * H * W, "effective weight A does not match the image geometry"

    TM = min(512, _round_up(max(N, 1), 8))          # batch tile (sublane-aligned)
    Np = _round_up(N, TM)
    G = Np // TM

    x = image.reshape(N, K).astype(jnp.bfloat16)    # lane-dense K, enters HBM once
    x = jnp.pad(x, ((0, Np - N), (0, 0)))
    tgt = targets.astype(jnp.int32).reshape(N, 1)
    tgt = jnp.pad(tgt, ((0, Np - N), (0, 0)))

    kernel = functools.partial(_block_kernel, n_valid=N, tm=TM)

    partial_losses = pl.pallas_call(
        kernel,
        out_shape=jax.ShapeDtypeStruct((G, 1), jnp.float32),
        grid=(G,),
        in_specs=[
            pl.BlockSpec((TM, K), lambda i: (i, 0)),      # x rows for this block
            pl.BlockSpec((K, Cout), lambda i: (0, 0)),    # A pinned across the grid
            pl.BlockSpec((TM, 1), lambda i: (i, 0)),      # targets for this block
        ],
        out_specs=pl.BlockSpec((1, 1), lambda i: (i, 0),
                               memory_space=pltpu.MemorySpace.SMEM),
        compiler_params=pltpu.CompilerParams(dimension_semantics=("parallel",)),
    )(x, A, tgt)

    return jnp.sum(partial_losses)                  # sum reduction, as in the module's nllloss


def _reference_loss(image, targets, weight):
    """Pure-JAX reference mirroring the PyTorch forward (f32 throughout)."""
    w_oihw = jnp.transpose(weight, (3, 2, 0, 1))                        # (Cout, Cin, 3, 3)
    y = jax.lax.conv_general_dilated(
        image, w_oihw, window_strides=(1, 1), padding=((1, 1), (1, 1)),
        dimension_numbers=("NCHW", "OIHW", "NCHW"))
    pooled = jnp.mean(y, axis=(2, 3))                                   # avg_pool2d + squeeze
    logprobs = jax.nn.log_softmax(pooled, axis=-1)                      # log(softmax(.))
    picked = logprobs[jnp.arange(targets.shape[0]), targets]
    return -jnp.sum(picked)


if __name__ == "__main__":
    key = jax.random.PRNGKey(0)
    k_img, k_w, k_t = jax.random.split(key, 3)

    N, H, W = 2, 16, 16
    image = jax.random.normal(k_img, (N, N_IN_CHANS, H, W), dtype=jnp.float32)
    targets = jax.random.randint(k_t, (N,), 0, N_OUT_CHANS, dtype=jnp.int32)
    fan_in = 9 * N_IN_CHANS
    weight = jax.random.normal(k_w, (3, 3, N_IN_CHANS, N_OUT_CHANS),
                               dtype=jnp.float32) * (1.0 / jnp.sqrt(fan_in))

    # A is data-independent: fold conv+pool ONCE for this weight (cache across calls).
    A = fold_conv_pool_weight(weight, H, W)

    loss = jax.block_until_ready(module0_loss(image, targets, A))
    ref = jax.block_until_ready(_reference_loss(image, targets, weight))

    # bf16 MXU inputs -> slightly looser tolerance than pure f32.
    assert jnp.allclose(loss, ref, rtol=1e-2, atol=1e-2), (loss, ref)

    print("KERNEL_OK")
</pallas_src>

<mosaic_0001>
module attributes {stable_mosaic.version = 11 : i64} {
  func.func @_block_kernel(%arg0: i32, %arg1: memref<8x768xbf16, #tpu.memory_space<vmem>>, %arg2: memref<768x10xbf16, #tpu.memory_space<vmem>>, %arg3: memref<8x1xi32, #tpu.memory_space<vmem>>, %arg4: memref<1x1xf32, #tpu.memory_space<smem>>) attributes {dimension_semantics = [#tpu.dimension_semantics<parallel>], iteration_bounds = array<i64: 1>, scalar_prefetch = 0 : i64, scratch_operands = 0 : i64, tpu.core_type = #tpu.core_type<tc>, window_params = [{transform_indices = @transform_0, window_bounds = array<i64: 8, 768>}, {pipeline_mode = #tpu.pipeline_mode<synchronous>, transform_indices = @transform_1, window_bounds = array<i64: 768, 10>}, {transform_indices = @transform_2, window_bounds = array<i64: 8, 1>}, {transform_indices = @transform_3, window_bounds = array<i64: 1, 1>}]} {
    %c0 = arith.constant 0 : index
    %c0_0 = arith.constant 0 : index
    %0 = vector.load %arg1[%c0, %c0_0] : memref<8x768xbf16, #tpu.memory_space<vmem>>, vector<8x768xbf16>
    %c0_1 = arith.constant 0 : index
    %c0_2 = arith.constant 0 : index
    %1 = vector.load %arg2[%c0_1, %c0_2] : memref<768x10xbf16, #tpu.memory_space<vmem>>, vector<768x10xbf16>
    %cst = arith.constant dense<0.000000e+00> : vector<8x10xf32>
    %2 = tpu.matmul %0, %1, %cst {dimension_numbers = #tpu.dot_dimension_numbers<[1], [0], [0], [1], [0, 0, 1, 1], [], []>} : vector<8x768xbf16>, vector<768x10xbf16>, vector<8x10xf32> -> vector<8x10xf32>
    %cst_3 = arith.constant dense<0xFF800000> : vector<8xf32>
    %3 = vector.multi_reduction <maximumf>, %2, %cst_3 [1] : vector<8x10xf32> to vector<8xf32>
    %4 = vector.shape_cast %3 : vector<8xf32> to vector<8x1xf32>
    %5 = vector.broadcast %4 : vector<8x1xf32> to vector<8x10xf32>
    %6 = arith.subf %2, %5 : vector<8x10xf32>
    %7 = math.exp %6 : vector<8x10xf32>
    %cst_4 = arith.constant dense<0.000000e+00> : vector<8xf32>
    %8 = vector.multi_reduction <add>, %7, %cst_4 [1] : vector<8x10xf32> to vector<8xf32>
    %9 = vector.shape_cast %8 : vector<8xf32> to vector<8x1xf32>
    %10 = math.log %9 : vector<8x1xf32>
    %11 = arith.addf %4, %10 : vector<8x1xf32>
    %12 = tpu.iota {dimensions = array<i32: 1>} : vector<8x10xi32>
    %c0_5 = arith.constant 0 : index
    %c0_6 = arith.constant 0 : index
    %13 = vector.load %arg3[%c0_5, %c0_6] : memref<8x1xi32, #tpu.memory_space<vmem>>, vector<8x1xi32>
    %14 = vector.broadcast %13 : vector<8x1xi32> to vector<8x10xi32>
    %15 = arith.cmpi eq, %12, %14 : vector<8x10xi32>
    %cst_7 = arith.constant 0.000000e+00 : f32
    %16 = vector.broadcast %cst_7 : f32 to vector<8x10xf32>
    %17 = arith.select %15, %2, %16 : vector<8x10xi1>, vector<8x10xf32>
    %cst_8 = arith.constant dense<0.000000e+00> : vector<8xf32>
    %18 = vector.multi_reduction <add>, %17, %cst_8 [1] : vector<8x10xf32> to vector<8xf32>
    %19 = vector.shape_cast %18 : vector<8xf32> to vector<8x1xf32>
    %c8_i32 = arith.constant 8 : i32
    %20 = arith.muli %arg0, %c8_i32 : i32
    %21 = tpu.iota {dimensions = array<i32: 0>} : vector<8x1xi32>
    %22 = vector.broadcast %20 : i32 to vector<8x1xi32>
    %23 = arith.addi %22, %21 : vector<8x1xi32>
    %c2_i32 = arith.constant 2 : i32
    %24 = vector.broadcast %c2_i32 : i32 to vector<8x1xi32>
    %25 = arith.cmpi slt, %23, %24 : vector<8x1xi32>
    %26 = arith.subf %11, %19 : vector<8x1xf32>
    %cst_9 = arith.constant 0.000000e+00 : f32
    %27 = vector.broadcast %cst_9 : f32 to vector<8x1xf32>
    %28 = arith.select %25, %26, %27 : vector<8x1xi1>, vector<8x1xf32>
    %29 = vector.shape_cast %28 : vector<8x1xf32> to vector<1x8x1xf32>
    %cst_10 = arith.constant dense<0.000000e+00> : vector<1xf32>
    %30 = vector.multi_reduction <add>, %29, %cst_10 [1, 2] : vector<1x8x1xf32> to vector<1xf32>
    %31 = vector.shape_cast %30 : vector<1xf32> to vector<1x1x1xf32>
    %32 = vector.extract %31[0, 0, 0] : f32 from vector<1x1x1xf32>
    %c0_11 = arith.constant 0 : index
    %c0_12 = arith.constant 0 : index
    %33 = memref.load %arg4[%c0_11, %c0_12] : memref<1x1xf32, #tpu.memory_space<smem>>
    memref.store %32, %arg4[%c0_11, %c0_12] : memref<1x1xf32, #tpu.memory_space<smem>>
    return
  }
  func.func @transform_0(%arg0: i32) -> (i32, i32) {
    %c0_i32 = arith.constant 0 : i32
    %c0_i32_0 = arith.constant 0 : i32
    return %arg0, %c0_i32 : i32, i32
  }
  func.func @transform_1(%arg0: i32) -> (i32, i32) {
    %c0_i32 = arith.constant 0 : i32
    %c0_i32_0 = arith.constant 0 : i32
    %c0_i32_1 = arith.constant 0 : i32
    return %c0_i32, %c0_i32_0 : i32, i32
  }
  func.func @transform_2(%arg0: i32) -> (i32, i32) {
    %c0_i32 = arith.constant 0 : i32
    %c0_i32_0 = arith.constant 0 : i32
    return %arg0, %c0_i32 : i32, i32
  }
  func.func @transform_3(%arg0: i32) -> (i32, i32) {
    %c0_i32 = arith.constant 0 : i32
    %c0_i32_0 = arith.constant 0 : i32
    return %arg0, %c0_i32 : i32, i32
  }
}

</mosaic_0001>

<bundles_post_ra>
// kernel: tpu_custom_call.1
= control target key start
LH: loop header
LB: loop body
LE: loop exit
PB: predicated region body
PF: predicated region fallthrough
CT: control target
= control target key end

     0   :  { %s990_s0 = inlined_call_operand.vmem [shape: bf16[8,768], index: 0, kind: input, shape index: {}]   ;;  %s991_s1 = inlined_call_operand.vmem [shape: bf16[768,10], index: 1, kind: input, shape index: {}]   ;;  %s992_s2 = inlined_call_operand.vmem [shape: s32[8,1], index: 2, kind: input, shape index: {}]   ;;  %s993_s3 = inlined_call_operand.hbm [shape: f32[1,1], index: 3, kind: output, shape index: {}]  }
   0x1   :  { %v727_v0 = vld [vmem:[%s991_s1 + $0x40] sm:$0xff]   ;;  %v731_v4 = vld [vmem:[%s991_s1 + $0x48] sm:$0xff]   ;;  %v735_v8 = vld [vmem:[%s991_s1 + $0x50] sm:$0xff]  }
   0x2   :  { %v728_v1 = vld [vmem:[%s991_s1 + $0xc0] sm:$0xff]   ;;  %656 = vmatprep.subr.bf16.mxu0 %v727_v0  ;;  %v732_v5 = vld [vmem:[%s991_s1 + $0xc8] sm:$0xff]   ;;  %v736_v9 = vld [vmem:[%s991_s1 + $0xd0] sm:$0xff]  }
   0x3   :  { %v729_v2 = vld [vmem:[%s991_s1] sm:$0xff]   ;;  %678 = vmatprep.subr.bf16.mxu1 %v728_v1  ;;  %v733_v6 = vld [vmem:[%s991_s1 + $0x8] sm:$0xff]   ;;  %v737_v10 = vld [vmem:[%s991_s1 + $0x10] sm:$0xff]  }
   0x4   :  { %v730_v3 = vld [vmem:[%s991_s1 + $0x80] sm:$0xff]   ;;  %657 = vmatpush3.bf16.msra.mxu0 %v729_v2  ;;  %v734_v7 = vld [vmem:[%s991_s1 + $0x88] sm:$0xff]   ;;  %v738_v11 = vld [vmem:[%s991_s1 + $0x90] sm:$0xff]  }
   0x5   :  { %679 = vmatpush3.bf16.msra.mxu1 %v730_v3  ;;  %658 = vmatprep.subr.bf16.mxu0 %v731_v4  ;;  %v739_v12 = vld [vmem:[%s991_s1 + $0x58] sm:$0xff]   ;;  %v743_v16 = vld [vmem:[%s991_s1 + $0x60] sm:$0xff]   ;;  %v747_v20 = vld [vmem:[%s991_s1 + $0x68] sm:$0xff]  }
   0x6   :  { %680 = vmatprep.subr.bf16.mxu1 %v732_v5  ;;  %v740_v13 = vld [vmem:[%s991_s1 + $0xd8] sm:$0xff]   ;;  %v744_v17 = vld [vmem:[%s991_s1 + $0xe0] sm:$0xff]   ;;  %v748_v21 = vld [vmem:[%s991_s1 + $0xe8] sm:$0xff]  }
   0x7   :  { %v741_v14 = vld [vmem:[%s991_s1 + $0x18] sm:$0xff]   ;;  %v745_v18 = vld [vmem:[%s991_s1 + $0x20] sm:$0xff]   ;;  %v749_v22 = vld [vmem:[%s991_s1 + $0x28] sm:$0xff]  }
   0x8   :  { %659 = vmatpush3.bf16.msra.mxu0 %v733_v6  ;;  %v742_v15 = vld [vmem:[%s991_s1 + $0x98] sm:$0xff]   ;;  %v746_v19 = vld [vmem:[%s991_s1 + $0xa0] sm:$0xff]   ;;  %v750_v23 = vld [vmem:[%s991_s1 + $0xa8] sm:$0xff]  }
   0x9   :  { %681 = vmatpush3.bf16.msra.mxu1 %v734_v7  ;;  %660 = vmatprep.subr.bf16.mxu0 %v735_v8  ;;  %v751_v24 = vld [vmem:[%s991_s1 + $0x70] sm:$0xff]   ;;  %v755_v28 = vld [vmem:[%s991_s1 + $0x78] sm:$0xff]   ;;  %v16_v32 = vld [vmem:[%s990_s0] sm:$0xff] }
   0xa   :  { %682 = vmatprep.subr.bf16.mxu1 %v736_v9  ;;  %v752_v25 = vld [vmem:[%s991_s1 + $0xf0] sm:$0xff]   ;;  %v756_v29 = vld [vmem:[%s991_s1 + $0xf8] sm:$0xff]   ;;  %v17_v33 = vld [vmem:[%s990_s0 + $0x8] sm:$0xff]  ;;  %v602_v34 = vcombine.low %v16_v32, %v16_v32  ;;  %v603_v35 = vcombine.high %v16_v32, %v16_v32 }
   0xb   :  { %v753_v26 = vld [vmem:[%s991_s1 + $0x30] sm:$0xff]   ;;  %v757_v30 = vld [vmem:[%s991_s1 + $0x38] sm:$0xff]   ;;  %v604_v36 = vcombine.low %v17_v33, %v17_v33  ;;  %v605_v37 = vcombine.high %v17_v33, %v17_v33  ;;  %v763_v38 = vld [vmem:[%s991_s1 + $0x140] sm:$0xff]  }
   0xc   :  { %661 = vmatpush3.bf16.msra.mxu0 %v737_v10  ;;  %v754_v27 = vld [vmem:[%s991_s1 + $0xb0] sm:$0xff]   ;;  %v758_v31 = vld [vmem:[%s991_s1 + $0xb8] sm:$0xff]   ;;  %v764_v39 = vld [vmem:[%s991_s1 + $0x100] sm:$0xff]   ;;  %456 = vmatprep.mubr.bf16.mxu0 %v603_v35 }
   0xd   :  { %683 = vmatpush3.bf16.msra.mxu1 %v738_v11  ;;  %662 = vmatprep.subr.bf16.mxu0 %v739_v12  ;;  %v765_v40 = vld [vmem:[%s991_s1 + $0x148] sm:$0xff]   ;;  %v767_v42 = vld [vmem:[%s991_s1 + $0x150] sm:$0xff]   ;;  %v769_v44 = vld [vmem:[%s991_s1 + $0x158] sm:$0xff]  }
   0xe   :  { %684 = vmatprep.subr.bf16.mxu1 %v740_v13  ;;  %496 = vmatprep.mubr.bf16.mxu1 %v605_v37  ;;  %v766_v41 = vld [vmem:[%s991_s1 + $0x108] sm:$0xff]   ;;  %v768_v43 = vld [vmem:[%s991_s1 + $0x110] sm:$0xff]   ;;  %v770_v45 = vld [vmem:[%s991_s1 + $0x118] sm:$0xff]  }
   0xf   :  { %v771_v46 = vld [vmem:[%s991_s1 + $0x160] sm:$0xff]   ;;  %v18_v47 = vld [vmem:[%s990_s0 + $0x10] sm:$0xff] }
  0x10   :  { %663 = vmatpush3.bf16.msra.mxu0 %v741_v14  ;;  %v607_v48 = vcombine.high %v18_v47, %v18_v47 }
  0x11   :  { %685 = vmatpush3.bf16.msra.mxu1 %v742_v15  ;;  %664 = vmatprep.subr.bf16.mxu0 %v743_v16 }
  0x12   :  { %686 = vmatprep.subr.bf16.mxu1 %v744_v17 }
  0x14   :  { %665 = vmatpush3.bf16.msra.mxu0 %v745_v18 }
  0x15   :  { %687 = vmatpush3.bf16.msra.mxu1 %v746_v19  ;;  %666 = vmatprep.subr.bf16.mxu0 %v747_v20 }
  0x16   :  { %688 = vmatprep.subr.bf16.mxu1 %v748_v21 }
  0x18   :  { %667 = vmatpush3.bf16.msra.mxu0 %v749_v22 }
  0x19   :  { %689 = vmatpush3.bf16.msra.mxu1 %v750_v23  ;;  %668 = vmatprep.subr.bf16.mxu0 %v751_v24 }
  0x1a   :  { %690 = vmatprep.subr.bf16.mxu1 %v752_v25 }
  0x1c   :  { %669 = vmatpush3.bf16.msra.mxu0 %v753_v26 }
  0x1d   :  { %691 = vmatpush3.bf16.msra.mxu1 %v754_v27  ;;  %670 = vmatprep.subr.bf16.mxu0 %v755_v28 }
  0x1e   :  { %692 = vmatprep.subr.bf16.mxu1 %v756_v29 }
  0x20   :  { %671 = vmatpush3.bf16.msra.mxu0 %v757_v30 }
  0x21   :  { %693 = vmatpush3.bf16.msra.mxu1 %v758_v31  ;;  %700 = vmatprep.subr.bf16.mxu0 %v763_v38 }
  0x23   :  { %457 = vmatmul.mubr.bf16.vlgmr.msra.gmra.mrb[0].mxu0 %v602_v34 }
  0x24   :  { %497 = vmatmul.mubr.bf16.vlgmr.msra.gmra.mrb[0].mxu1 %v604_v36  ;;  %701 = vmatpush3.bf16.msra.mxu0 %v764_v39 }
  0x25   :  { %702 = vmatprep.subr.bf16.mxu0 %v765_v40 }
  0x28   :  { %703 = vmatpush3.bf16.msra.mxu0 %v766_v41 }
  0x29   :  { %704 = vmatprep.subr.bf16.mxu0 %v767_v42 }
  0x2c   :  { %705 = vmatpush3.bf16.msra.mxu0 %v768_v43 }
  0x2d   :  { %706 = vmatprep.subr.bf16.mxu0 %v769_v44 }
  0x2e   :  { %8 = vsyncpa [#allocation3], 0  ;;  %v772_v49 = vld [vmem:[%s991_s1 + $0x120] sm:$0xff]   ;;  %v773_v50 = vld [vmem:[%s991_s1 + $0x168] sm:$0xff]   ;;  %536 = vmatprep.mubr.bf16.mxu0 %v607_v48  ;;  %v606_v56 = vcombine.low %v18_v47, %v18_v47  ;;  %v797_v57 = vmov 0   ;;  %vm544_vm0 = vcmask 80896   ;;  %v557_v16 = vlaneseq }
  0x2f   :  { %v774_v51 = vld [vmem:[%s991_s1 + $0x128] sm:$0xff]   ;;  %v775_v52 = vld [vmem:[%s991_s1 + $0x170] sm:$0xff]   ;;  %v777_v54 = vld [vmem:[%s991_s1 + $0x178] sm:$0xff]   ;;  %726 = vset.pattern.permute.xlu0 %v797_v57  ;;  %vm576_vm3 = vcmask 7168   ;;  %s785_s8 = scalar_lea.hbm %s993_s3, 16 }
  0x30   :  { %707 = vmatpush3.bf16.msra.mxu0 %v770_v45  ;;  %v776_v53 = vld [vmem:[%s991_s1 + $0x130] sm:$0xff]   ;;  %v778_v55 = vld [vmem:[%s991_s1 + $0x138] sm:$0xff]   ;;  %v559_v12 = vld [vmem:[%s992_s2] sm:$0xff]  ;;  %v558_v17 = vand.u32 127, %v557_v16  ;;  %v570_v25 = vshrl.u32 %v557_v16, 7  ;;  %p786_p0 = scmp.ne.s32.totalorder %s993_s3, %s785_s8  ;;  %p789_p1 = scmp.lt.u32.totalorder %s785_s8, %s993_s3 }
  0x31   :  { %708 = vmatprep.subr.bf16.mxu0 %v771_v46 }
  0x32   :  { %vm573_vm2 = vcmp.lt.s32.totalorder %v570_v25, 2  ;;  %p791_p2 = pnand %p789_p1, %p786_p0 }
  0x34   :  { %709 = vmatpush3.bf16.msra.mxu0 %v772_v49 }
  0x35   :  { %710 = vmatprep.subr.bf16.mxu0 %v773_v50 }
  0x38   :  { %711 = vmatpush3.bf16.msra.mxu0 %v774_v51 }
  0x39   :  { %712 = vmatprep.subr.bf16.mxu0 %v775_v52 }
  0x3c   :  { %713 = vmatpush3.bf16.msra.mxu0 %v776_v53 }
  0x3d   :  { %714 = vmatprep.subr.bf16.mxu0 %v777_v54 }
  0x40   :  { %715 = vmatpush3.bf16.msra.mxu0 %v778_v55 }
  0x43   :  { %537 = vmatmul.mubr.bf16.vlgmr.msra.gmra.mrb[4].mxu0 %v606_v56 }
  0xf6   :  { %v672_v58 = vpop.f32.mrb[0].mxu0 }
  0xf7   :  { %v694_v59 = vpop.f32.mrb[0].mxu1  ;;  %v673_v60 = vpop.f32.mrb[1].mxu0 }
  0xf8   :  { %v695_v61 = vpop.f32.mrb[1].mxu1  ;;  %v674_v62 = vadd.f32 %v673_v60, %v672_v58  ;;  %v675_v0 = vpop.f32.mrb[2].mxu0 }
  0xf9   :  { %v696_v63 = vadd.f32 %v695_v61, %v694_v59  ;;  %v697_v1 = vpop.f32.mrb[2].mxu1  ;;  %v676_v2 = vpop.f32.mrb[3].mxu0 }
  0xfa   :  { %v698_v3 = vpop.f32.mrb[3].mxu1 }
  0xfb   :  { %v499_v4 = vadd.f32 %v696_v63, %v674_v62 }
 0x116   :  { %v716_v5 = vpop.f32.mrb[4].mxu0 }
 0x117   :  { %v717_v6 = vpop.f32.mrb[5].mxu0 }
 0x118   :  { %v718_v7 = vadd.f32 %v717_v6, %v716_v5  ;;  %v719_v8 = vpop.f32.mrb[6].mxu0 }
 0x119   :  { %v720_v9 = vpop.f32.mrb[7].mxu0 }
 0x11a   :  { %v539_v10 = vadd.f32 %v718_v7, %v499_v4 }
 0x11c   :  { %v545_v11 = vsel %vm544_vm0, %v539_v10, -inf }
 0x11d   :  { %546 = vmax.xlane.f32.xlu0 %v545_v11 }
 0x133   :  { %561 = vperm.xlu0 %726, %v559_v12  }
 0x1aa   :  { %v547_v13 = vpop.xlane.xlu0 %546 }
 0x1ab   :  { %v548_v14 = vsub.f32 %v539_v10, %v547_v13 }
 0x1ad   :  { %v549_v15 = vmul.f32 1.442695, %v548_v14 }
 0x1af   :  { %781 = vpow2.f32 %v549_v15 }
 0x1b2   :  { %v562_v18 = vpop.permute.xlu0 %561 }
 0x1b3   :  { %vm563_vm1 = vcmp.eq.s32.totalorder %v558_v17, %v562_v18 }
 0x1b4   :  { %v564_v21 = vsel %vm563_vm1, %v539_v10, 0.0 }
 0x1b5   :  { %v565_v22 = vsel %vm544_vm0, %v564_v21, 0.0 }
 0x1b9   :  { %v782_v19 = vpop.eup %781 }
 0x1ba   :  { %v551_v20 = vsel %vm544_vm0, %v782_v19, 0.0 }
 0x1bb   :  { %552 = vadd.xlane.f32.xlu1 %v551_v20 }
 0x1bf   :  { %566 = vadd.xlane.f32.xlu1 %v565_v22 }
 0x248   :  { %v553_v23 = vpop.xlane.xlu1 %552 }
 0x249   :  { %783 = vlog2.f32 %v553_v23 }
 0x24c   :  { %v567_v28 = vpop.xlane.xlu1 %566 }
 0x253   :  { %v784_v24 = vpop.eup %783 }
 0x254   :  { %v555_v26 = vmul.f32 0.6931472, %v784_v24 }
 0x256   :  { %v556_v27 = vadd.f32 %v555_v26, %v547_v13 }
 0x258   :  { %v574_v29 = vsub.f32 %v556_v27, %v567_v28 }
 0x25a   :  { %v575_v30 = vsel %vm573_vm2, %v574_v29, 0.0 }
 0x25b   :  { %v577_v31 = vsel %vm576_vm3, %v575_v30, 0.0 }
 0x25c   :  { %578 = vadd.xlane.f32.xlu1 %v577_v31 }
 0x2e9   :  { %v579_v32 = vpop.xlane.xlu1 %578 }
 0x2ea   :  { %v580_v33 = vrot.slane %v579_v32, 4 }
 0x2ec   :  { %v581_v34 = vadd.f32 %v580_v33, %v579_v32 }
 0x2ee   :  { %v582_v35 = vrot.slane %v581_v34, 2 }
 0x2f0   :  { %v583_v36 = vadd.f32 %v582_v35, %v581_v34 }
 0x2f2   :  { %v584_v37 = vrot.slane %v583_v36, 1 }
 0x2f4   :  { %v585_v38 = vadd.f32 %v584_v37, %v583_v36 }
 0x2f6   :  { %722 = vpush %v585_v38 }
 0x327   :  { %s723_s2 = spop %722 }
 0x328   :  { %588 = sst [smem:[#allocation2]] %s723_s2 }
 0x329   :  { %794 = shalt.err (!%p791_p2)
}
 0x32a   :  { %s798_s13 = smov [#allocation2]  }
 0x32b   :  { %596 = dma.smem_to_hbm %s798_s13, 16, %s993_s3, [#allocation3]  }
 0x32c   :  { %795 = dma.done.wait [#allocation3], 16  }
 0x32d   :  { %796 = vsyncadd [#allocation3], 4294967280 }
 0x32e   :  { %600 = sfence }
 0x32f   :  { %601 = vsyncpa [#allocation3], 1 }

</bundles_post_ra>
